<compile_context>
chip_gen: v6e
topology: v6e:2x2x1
jax: 0.10.0
libtpu: 0.0.40
codegen_flags: <defaults>
</compile_context>

<pallas_src>
import jax
import jax.numpy as jnp
from jax.experimental import pallas as pl
from jax.experimental.pallas import tpu as pltpu


def _round_up(a: int, b: int) -> int:
    return (a + b - 1) // b * b


# ---------------------------------------------------------------------------
# Kernel
# ---------------------------------------------------------------------------
def swiglu_kernel(x_ref, w12_ref, w3_ref, o_ref, acc_ref=None):
    """One grid step: (tm, Ep) row tile of X against one H-tile of the fused weights.

    Grid = (row tiles ["parallel"], H tiles ["arbitrary" reduction]).
    If acc_ref is None, the output block itself (f32, resident across h) is the
    accumulator; otherwise an f32 VMEM scratch is used and cast on the last h step.
    """
    th = w12_ref.shape[1] // 2            # static H-tile width
    h = pl.program_id(1)
    acc = o_ref if acc_ref is None else acc_ref

    @pl.when(h == 0)
    def _init():
        acc[...] = jnp.zeros_like(acc)

    x = x_ref[...]                                                      # (tm, Ep)   bf16
    # Fused gate/up projection: a single MXU pass over x per H-tile.
    gu = jnp.dot(x, w12_ref[...], preferred_element_type=jnp.float32)   # (tm, 2*th) f32
    gate = gu[:, :th]                                                   # fc1(x)
    up = gu[:, th:]                                                     # fc2(x)
    hidden = (gate * (up * jax.nn.sigmoid(up))).astype(w3_ref.dtype)    # (tm, th)   bf16
    acc[...] += jnp.dot(hidden, w3_ref[...],
                        preferred_element_type=jnp.float32)             # (tm, Ep)   f32

    if acc_ref is not None:
        @pl.when(h == pl.num_programs(1) - 1)
        def _store():
            o_ref[...] = acc_ref[...].astype(o_ref.dtype)


# ---------------------------------------------------------------------------
# Generation-aware planning
# ---------------------------------------------------------------------------
def _chip_defaults():
    kind = ""
    try:
        kind = jax.devices()[0].device_kind.lower()
    except Exception:
        pass
    if ("v5 lite" in kind) or ("v5e" in kind) or ("v5lite" in kind):
        # 128 MiB VMEM, ~0.82 TB/s: near compute-bound at tm=256; th=512 halves the
        # f32 accumulator RMW traffic (single vst slot) and the grid-step count.
        cfg = dict(tm=256, th=512, e_align=128, cores=1, vmem_cap=128 << 20)
    elif "v6" in kind:
        # 128 MiB VMEM, ~1.4 TB/s: need tm >~ 650 FLOPs/byte to reach the MXU roofline.
        cfg = dict(tm=768, th=256, e_align=256, cores=1, vmem_cap=128 << 20)
    elif "v7" in kind:
        # 64 MiB VMEM per TC, 2 TCs/chip, ~3.2 TB/s: crossover ~310 FLOPs/byte.
        cfg = dict(tm=512, th=256, e_align=256, cores=2, vmem_cap=64 << 20)
    else:
        cfg = dict(tm=256, th=256, e_align=128, cores=1, vmem_cap=64 << 20)
    try:  # refine the VMEM capacity if the runtime query is available
        cfg["vmem_cap"] = int(pltpu.get_tpu_info().vmem_capacity_bytes)
    except Exception:
        pass
    return cfg


def _vmem_need(tm, th, Ep, out_itemsize, use_scratch, cdt_size=2):
    """Estimate the kernel's VMEM working set (double-buffered tiles + temps)."""
    x_t = tm * Ep * cdt_size * 2            # X row tile
    w12_t = Ep * (2 * th) * cdt_size * 2    # fused W1|W2 tile
    w3_t = th * Ep * cdt_size * 2           # W3 tile
    o_t = tm * Ep * out_itemsize * 2        # output tile
    acc_t = tm * Ep * 4 if use_scratch else 0
    tmp_t = tm * (2 * th) * 4 + tm * th * (4 + cdt_size)   # gu f32 + gate*act temps
    return x_t + w12_t + w3_t + o_t + acc_t + tmp_t


def plan_swiglu(M, E, H, out_dtype, *, compute_dtype=jnp.bfloat16):
    """Pick generation-aware tile sizes, padded dims and VMEM budget."""
    cfg = _chip_defaults()
    out_itemsize = jnp.dtype(out_dtype).itemsize
    use_scratch = jnp.dtype(out_dtype) != jnp.float32   # f32 out -> accumulate in o_ref

    Ep = _round_up(E, cfg["e_align"])                    # 256-align on v6e/v7x (2x256 MXU)
    th = max(128, min(_round_up(cfg["th"], 128), _round_up(H, 128)))
    Hp = _round_up(H, th)

    tm = _round_up(max(16, min(cfg["tm"], _round_up(M, 16))), 16)  # bf16 sublane packing
    Mp = _round_up(M, tm)

    # Megacore (v7x): ensure the "parallel" row axis has >= num_cores tiles.
    while cfg["cores"] > 1 and Mp // tm < cfg["cores"] and tm > 16:
        tm = _round_up(max(16, tm // 2), 16)
        Mp = _round_up(M, tm)

    # Shrink tiles until the double-buffered working set fits this chip's VMEM.
    budget = min(cfg["vmem_cap"] - (8 << 20), int(cfg["vmem_cap"] * 0.88))
    while _vmem_need(tm, th, Ep, out_itemsize, use_scratch) > budget:
        if tm > 64:
            tm = _round_up(tm // 2, 16)
        elif th > 128:
            th = _round_up(th // 2, 128)
        else:
            break
        Mp = _round_up(M, tm)
        Hp = _round_up(H, th)

    need = _vmem_need(tm, th, Ep, out_itemsize, use_scratch)
    vmem_limit = int(min(budget, max(int(need * 1.5) + (4 << 20), 32 << 20)))

    return dict(tm=tm, th=th, Ep=Ep, Hp=Hp, use_scratch=use_scratch,
                vmem_limit=vmem_limit, compute_dtype=compute_dtype)


# ---------------------------------------------------------------------------
# One-time weight packing (hoisted out of the hot path)
# ---------------------------------------------------------------------------
def pack_swiglu_weights(w1, w2, w3, plan):
    """Cast to the compute dtype, pad to (Ep, Hp)/(Hp, Ep) and tile-interleave W1|W2
    so each (Ep, 2*th) block is [W1-tile | W2-tile].  Call once at weight-load time."""
    E, H = w1.shape
    Ep, Hp, th = plan["Ep"], plan["Hp"], plan["th"]
    cdt = plan["compute_dtype"]
    Hn = Hp // th
    w1p = jnp.pad(w1.astype(cdt), ((0, Ep - E), (0, Hp - H)))
    w2p = jnp.pad(w2.astype(cdt), ((0, Ep - E), (0, Hp - H)))
    w3p = jnp.pad(w3.astype(cdt), ((0, Hp - H), (0, Ep - E)))
    w12 = jnp.concatenate(
        [w1p.reshape(Ep, Hn, th), w2p.reshape(Ep, Hn, th)], axis=2
    ).reshape(Ep, 2 * Hp)
    return w12, w3p


# ---------------------------------------------------------------------------
# Forward pass on packed weights
# ---------------------------------------------------------------------------
def swiglu_ffn_packed(x, w12, w3p, plan):
    """x: (..., E).  w12/w3p from pack_swiglu_weights.  Returns (..., E) in x.dtype."""
    orig_shape = x.shape
    E = orig_shape[-1]
    x2 = x.reshape(-1, E)
    M = x2.shape[0]

    tm, th, Ep, Hp = plan["tm"], plan["th"], plan["Ep"], plan["Hp"]
    cdt = plan["compute_dtype"]
    use_scratch = plan["use_scratch"]
    Hn = Hp // th
    Mp = _round_up(M, tm)
    out_dtype = x.dtype

    xp = jnp.pad(x2.astype(cdt), ((0, Mp - M), (0, Ep - E)))

    w_bytes = (w12.size + w3p.size) * jnp.dtype(cdt).itemsize
    cost = pl.CostEstimate(
        flops=6 * Mp * Ep * Hp,
        transcendentals=Mp * Hp,
        bytes_accessed=int(
            xp.size * jnp.dtype(cdt).itemsize            # X read once (resident over h)
            + w_bytes * (Mp // tm)                        # weights re-streamed per row tile
            + Mp * Ep * jnp.dtype(out_dtype).itemsize     # output written once
        ),
    )

    scratch = [pltpu.VMEM((tm, Ep), jnp.float32)] if use_scratch else []

    # TODO(synk): if profiling on v6e (once MXU-bound) still shows exposed DMA at h-step
    # boundaries, try pipeline_mode=pl.Buffered(3) on the W12/W3 specs (keep 2 on v7x).
    out = pl.pallas_call(
        swiglu_kernel,
        out_shape=jax.ShapeDtypeStruct((Mp, Ep), out_dtype),
        grid_spec=pltpu.PrefetchScalarGridSpec(
            num_scalar_prefetch=0,
            grid=(Mp // tm, Hn),                                    # (rows, H reduction)
            in_specs=[
                pl.BlockSpec((tm, Ep), lambda i, h: (i, 0)),        # X row tile (resident)
                pl.BlockSpec((Ep, 2 * th), lambda i, h: (0, h)),    # fused W1|W2 H-tile
                pl.BlockSpec((th, Ep), lambda i, h: (h, 0)),        # W3 H-tile
            ],
            out_specs=pl.BlockSpec((tm, Ep), lambda i, h: (i, 0)),  # resident across h
            scratch_shapes=scratch,
        ),
        compiler_params=pltpu.CompilerParams(
            dimension_semantics=("parallel", "arbitrary"),
            vmem_limit_bytes=plan["vmem_limit"],
        ),
        cost_estimate=cost,
    )(xp, w12, w3p)

    return out[:M, :E].reshape(orig_shape)


def swiglu_ffn(x, w1, w2, w3):
    """Convenience wrapper (plans + packs per call).  Real models should call
    plan_swiglu / pack_swiglu_weights once at weight-load time and reuse
    swiglu_ffn_packed; packing re-reads ~3*E*H weights from HBM per call."""
    E, H = w1.shape
    M = 1
    for d in x.shape[:-1]:
        M *= d
    plan = plan_swiglu(M, E, H, x.dtype)
    w12, w3p = pack_swiglu_weights(w1, w2, w3, plan)
    return swiglu_ffn_packed(x, w12, w3p, plan)


def swiglu_ref(x, w1, w2, w3):
    gate = x @ w1
    up = x @ w2
    return (gate * (up * jax.nn.sigmoid(up))) @ w3


if __name__ == "__main__":
    batch, seq, embed_dim, hidden_dim = 2, 8, 32, 64

    key = jax.random.PRNGKey(0)
    kx, k1, k2, k3 = jax.random.split(key, 4)

    # Deterministic synthetic parameters (nn.Linear weights, pre-transposed to (in, out)).
    x = jax.random.normal(kx, (batch, seq, embed_dim), dtype=jnp.float32)
    w1 = jax.random.normal(k1, (embed_dim, hidden_dim), dtype=jnp.float32) * 0.05
    w2 = jax.random.normal(k2, (embed_dim, hidden_dim), dtype=jnp.float32) * 0.05
    w3 = jax.random.normal(k3, (hidden_dim, embed_dim), dtype=jnp.float32) * 0.05

    # One-time packing path (what a real model would do at weight-load time).
    plan = plan_swiglu(batch * seq, embed_dim, hidden_dim, x.dtype)
    w12, w3p = pack_swiglu_weights(w1, w2, w3, plan)
    out = jax.block_until_ready(swiglu_ffn_packed(x, w12, w3p, plan))

    ref = swiglu_ref(x, w1, w2, w3)
    assert out.shape == (batch, seq, embed_dim)
    assert out.dtype == x.dtype
    # bf16 operands with f32 accumulation: compare against the f32 reference with a
    # bf16-appropriate tolerance.
    assert jnp.allclose(out, ref, atol=2e-2, rtol=2e-2), "mismatch vs reference"

    print("KERNEL_OK")
</pallas_src>

<mosaic_0001>
module attributes {stable_mosaic.version = 11 : i64} {
  func.func @swiglu_kernel(%arg0: i32, %arg1: i32, %arg2: memref<16x128xbf16, #tpu.memory_space<vmem>>, %arg3: memref<128x256xbf16, #tpu.memory_space<vmem>>, %arg4: memref<128x128xbf16, #tpu.memory_space<vmem>>, %arg5: memref<16x128xf32, #tpu.memory_space<vmem>>) attributes {dimension_semantics = [#tpu.dimension_semantics<parallel>, #tpu.dimension_semantics<arbitrary>], iteration_bounds = array<i64: 1, 1>, scalar_prefetch = 0 : i64, scratch_operands = 0 : i64, tpu.core_type = #tpu.core_type<tc>, window_params = [{transform_indices = @transform_0, window_bounds = array<i64: 16, 128>}, {transform_indices = @transform_1, window_bounds = array<i64: 128, 256>}, {transform_indices = @transform_2, window_bounds = array<i64: 128, 128>}, {transform_indices = @transform_3, window_bounds = array<i64: 16, 128>}]} {
    %c0_i32 = arith.constant 0 : i32
    %0 = arith.cmpi eq, %arg1, %c0_i32 : i32
    %1 = arith.extui %0 : i1 to i32
    %c0_i32_0 = arith.constant 0 : i32
    %2 = arith.cmpi ne, %1, %c0_i32_0 : i32
    scf.if %2 {
      %cst_12 = arith.constant 0.000000e+00 : f32
      %21 = vector.broadcast %cst_12 : f32 to vector<16x128xf32>
      %c0_13 = arith.constant 0 : index
      %c0_14 = arith.constant 0 : index
      %22 = vector.load %arg5[%c0_13, %c0_14] : memref<16x128xf32, #tpu.memory_space<vmem>>, vector<16x128xf32>
      tpu.vector_store %arg5[%c0_13, %c0_14], %21 {strides = array<i32>} : memref<16x128xf32, #tpu.memory_space<vmem>>, vector<16x128xf32>,
    } else {
    }
    %c0 = arith.constant 0 : index
    %c0_1 = arith.constant 0 : index
    %3 = vector.load %arg2[%c0, %c0_1] : memref<16x128xbf16, #tpu.memory_space<vmem>>, vector<16x128xbf16>
    %c0_2 = arith.constant 0 : index
    %c0_3 = arith.constant 0 : index
    %4 = vector.load %arg3[%c0_2, %c0_3] : memref<128x256xbf16, #tpu.memory_space<vmem>>, vector<128x256xbf16>
    %cst = arith.constant dense<0.000000e+00> : vector<16x256xf32>
    %5 = tpu.matmul %3, %4, %cst {dimension_numbers = #tpu.dot_dimension_numbers<[1], [0], [0], [1], [0, 0, 1, 1], [], []>} : vector<16x128xbf16>, vector<128x256xbf16>, vector<16x256xf32> -> vector<16x256xf32>
    %6 = vector.extract_strided_slice %5 {offsets = [0, 0], sizes = [16, 128], strides = [1, 1]} : vector<16x256xf32> to vector<16x128xf32>
    %7 = vector.extract_strided_slice %5 {offsets = [0, 128], sizes = [16, 128], strides = [1, 1]} : vector<16x256xf32> to vector<16x128xf32>
    %8 = arith.negf %7 : vector<16x128xf32>
    %9 = math.exp %8 : vector<16x128xf32>
    %cst_4 = arith.constant 1.000000e+00 : f32
    %10 = vector.broadcast %cst_4 : f32 to vector<16x128xf32>
    %11 = arith.addf %10, %9 : vector<16x128xf32>
    %12 = arith.divf %10, %11 : vector<16x128xf32>
    %13 = arith.mulf %7, %12 : vector<16x128xf32>
    %14 = arith.mulf %6, %13 : vector<16x128xf32>
    %15 = arith.truncf %14 : vector<16x128xf32> to vector<16x128xbf16>
    %c0_5 = arith.constant 0 : index
    %c0_6 = arith.constant 0 : index
    %16 = vector.load %arg5[%c0_5, %c0_6] : memref<16x128xf32, #tpu.memory_space<vmem>>, vector<16x128xf32>
    %c0_7 = arith.constant 0 : index
    %c0_8 = arith.constant 0 : index
    %17 = vector.load %arg4[%c0_7, %c0_8] : memref<128x128xbf16, #tpu.memory_space<vmem>>, vector<128x128xbf16>
    %cst_9 = arith.constant dense<0.000000e+00> : vector<16x128xf32>
    %18 = tpu.matmul %15, %17, %cst_9 {dimension_numbers = #tpu.dot_dimension_numbers<[1], [0], [0], [1], [0, 0, 1, 1], [], []>} : vector<16x128xbf16>, vector<128x128xbf16>, vector<16x128xf32> -> vector<16x128xf32>
    %19 = arith.addf %16, %18 : vector<16x128xf32>
    %c0_10 = arith.constant 0 : index
    %c0_11 = arith.constant 0 : index
    %20 = vector.load %arg5[%c0_10, %c0_11] : memref<16x128xf32, #tpu.memory_space<vmem>>, vector<16x128xf32>
    tpu.vector_store %arg5[%c0_10, %c0_11], %19 {strides = array<i32>} : memref<16x128xf32, #tpu.memory_space<vmem>>, vector<16x128xf32>,
    return
  }
  func.func @transform_0(%arg0: i32, %arg1: i32) -> (i32, i32) {
    %c0_i32 = arith.constant 0 : i32
    %c0_i32_0 = arith.constant 0 : i32
    return %arg0, %c0_i32 : i32, i32
  }
  func.func @transform_1(%arg0: i32, %arg1: i32) -> (i32, i32) {
    %c0_i32 = arith.constant 0 : i32
    %c0_i32_0 = arith.constant 0 : i32
    return %c0_i32, %arg1 : i32, i32
  }
  func.func @transform_2(%arg0: i32, %arg1: i32) -> (i32, i32) {
    %c0_i32 = arith.constant 0 : i32
    %c0_i32_0 = arith.constant 0 : i32
    return %arg1, %c0_i32 : i32, i32
  }
  func.func @transform_3(%arg0: i32, %arg1: i32) -> (i32, i32) {
    %c0_i32 = arith.constant 0 : i32
    %c0_i32_0 = arith.constant 0 : i32
    return %arg0, %c0_i32 : i32, i32
  }
}

</mosaic_0001>

<bundles_post_ra>
// kernel: tpu_custom_call.1
= control target key start
LH: loop header
LB: loop body
LE: loop exit
PB: predicated region body
PF: predicated region fallthrough
CT: control target
= control target key end

     0   :  { %8 = vsyncpa [#allocation3], 0  ;;  %s599_s0 = inlined_call_operand.hbm [shape: bf16[16,128], index: 0, kind: input, shape index: {}]   ;;  %s600_s1 = inlined_call_operand.hbm [shape: bf16[128,256], index: 1, kind: input, shape index: {}]   ;;  %s601_s2 = inlined_call_operand.hbm [shape: bf16[128,128], index: 2, kind: input, shape index: {}]   ;;  %s602_s3 = inlined_call_operand.hbm [shape: f32[16,128], index: 3, kind: output, shape index: {}]  }
   0x1   :  { %9 = vsyncpa [#allocation6], 0 }
   0x2   :  { %10 = vsyncpa [#allocation4], 0  ;;  %s550_s12 = smov [#allocation5]  }
   0x3   :  { %s28_s13 = sshll.u32 %s550_s12, 4  ;;  %s29_s13 = int_to_ptr.vmem [resolvable:$true] %s28_s13 }
   0x4   :  { %s472_s14 = scalar_lea.vmem %s29_s13, 2048  ;;  %p477_p1 = scmp.lt.s32.totalorder %s29_s13, %s29_s13 }
   0x5   :  { %p473_p0 = scmp.ne.s32.totalorder %s29_s13, %s472_s14  ;;  %p478_p2 = scmp.lt.s32.totalorder %s472_s14, %s472_s14 }
   0x7   :  { %p479_p3 = por %p478_p2, %p477_p1 }
   0x9   :  { %p480_p4 = pnand %p479_p3, %p473_p0 }
   0xb   :  { %483 = shalt.err (!%p480_p4)
}
   0xc   :  { %s551_s15 = smov 128   ;;  %s552_s16 = smov 8  }
   0xd   :  { %34 = dma.hbm_to_vmem [thread:$0]  %s600_s1, 2048, %s29_s13, [#allocation6], %s551_s15, %s551_s15, %s552_s16  }
   0xe   :  { %s553_s19 = smov [#allocation2]  }
   0xf   :  { %s16_s20 = sshll.u32 %s553_s19, 4  ;;  %s17_s20 = int_to_ptr.vmem [resolvable:$true] %s16_s20 }
  0x10   :  { %s492_s21 = scalar_lea.vmem %s17_s20, 128  ;;  %p497_p6 = scmp.lt.s32.totalorder %s17_s20, %s17_s20 }
  0x11   :  { %p493_p5 = scmp.ne.s32.totalorder %s17_s20, %s492_s21  ;;  %p498_p7 = scmp.lt.s32.totalorder %s492_s21, %s492_s21 }
  0x13   :  { %p499_p8 = por %p498_p7, %p497_p6 }
  0x15   :  { %p500_p9 = pnand %p499_p8, %p493_p5 }
  0x17   :  { %503 = shalt.err (!%p500_p9)
}
  0x18   :  { %s554_s22 = smov 64   ;;  %s555_s23 = smov 4  }
  0x19   :  { %22 = dma.hbm_to_vmem [thread:$0]  %s599_s0, 128, %s17_s20, [#allocation3], %s554_s22, %s554_s22, %s555_s23  }
  0x1a   :  { %s556_s26 = smov [#allocation7]  }
  0x1b   :  { %s40_s27 = sshll.u32 %s556_s26, 4  ;;  %s41_s27 = int_to_ptr.vmem [resolvable:$true] %s40_s27 }
  0x1c   :  { %s512_s1 = scalar_lea.vmem %s41_s27, 1024  ;;  %p517_p11 = scmp.lt.s32.totalorder %s41_s27, %s41_s27 }
  0x1d   :  { %p513_p10 = scmp.ne.s32.totalorder %s41_s27, %s512_s1  ;;  %p518_p12 = scmp.lt.s32.totalorder %s512_s1, %s512_s1 }
  0x1f   :  { %p519_p13 = por %p518_p12, %p517_p11 }
  0x21   :  { %p520_p0 = pnand %p519_p13, %p513_p10 }
  0x23   :  { %523 = shalt.err (!%p520_p0)
}
  0x24   :  { %46 = dma.hbm_to_vmem [thread:$0]  %s601_s2, 1024, %s41_s27, [#allocation6], %s554_s22, %s554_s22, %s555_s23  }
  0x25   :  { %544 = dma.done.wait [#allocation3], 128  }
  0x26   :  { %545 = vsyncadd [#allocation3], 4294967168 }
  0x27   :  { %546 = dma.done.wait [#allocation6], 3072  }
  0x28   :  { %547 = vsyncadd [#allocation6], 4294964224  ;;  %v557_v0 = vmov 0   ;;  %v423_v1 = vld [vmem:[#allocation5 + $0x74] ss:$8 sps:$4 sm:$0xff]   ;;  %v558_v19 = vmov 0.0  }
  0x29   :  { %199 = vmatprep.mubr.bf16.mxu0 %v557_v0  ;;  %v425_v2 = vld [vmem:[#allocation5 + $0x70] ss:$8 sps:$4 sm:$0xff]   ;;  %167 = vmatprep.subr.bf16.mxu0 %v423_v1  ;;  %v426_v3 = vld [vmem:[#allocation5 + $0x64] ss:$8 sps:$4 sm:$0xff]   ;;  %v428_v4 = vld [vmem:[#allocation5 + $0x60] ss:$8 sps:$4 sm:$0xff]  }
  0x2a   :  { %168 = vmatpush1.bf16.msra.mxu0 %v425_v2  ;;  %v429_v5 = vld [vmem:[#allocation5 + $0x54] ss:$8 sps:$4 sm:$0xff]   ;;  %v431_v6 = vld [vmem:[#allocation5 + $0x50] ss:$8 sps:$4 sm:$0xff]   ;;  %v432_v7 = vld [vmem:[#allocation5 + $0x44] ss:$8 sps:$4 sm:$0xff]   ;;  %392 = vmatprep.subr.bf16.mxu1 %v558_v19 }
  0x2b   :  { %169 = vmatprep.subr.bf16.mxu0 %v426_v3  ;;  %v434_v8 = vld [vmem:[#allocation5 + $0x40] ss:$8 sps:$4 sm:$0xff]   ;;  %v435_v9 = vld [vmem:[#allocation5 + $0x34] ss:$8 sps:$4 sm:$0xff]   ;;  %v437_v10 = vld [vmem:[#allocation5 + $0x30] ss:$8 sps:$4 sm:$0xff]  }
  0x2c   :  { %v438_v11 = vld [vmem:[#allocation5 + $0x24] ss:$8 sps:$4 sm:$0xff]   ;;  %v440_v12 = vld [vmem:[#allocation5 + $0x20] ss:$8 sps:$4 sm:$0xff]   ;;  %v441_v13 = vld [vmem:[#allocation5 + $0x14] ss:$8 sps:$4 sm:$0xff]  }
  0x2d   :  { %v443_v14 = vld [vmem:[#allocation5 + $0x10] ss:$8 sps:$4 sm:$0xff]   ;;  %v444_v15 = vld [vmem:[#allocation5 + $0x4] ss:$8 sps:$4 sm:$0xff]   ;;  %v446_v16 = vld [vmem:[#allocation5] ss:$8 sps:$4 sm:$0xff]  }
  0x2e   :  { %170 = vmatpush1.bf16.msra.mxu0 %v428_v4  ;;  %v447_v17 = vld [vmem:[#allocation2] sm:$0xff]   ;;  %v449_v20 = vld [vmem:[#allocation7 + $0x30] sm:$0xff]   ;;  %v450_v21 = vld [vmem:[#allocation7 + $0x28] sm:$0xff]   ;;  %vm559_vm0 = vmmov 0   ;;  %s560_s0 = smov [#allocation8]  }
  0x2f   :  { %171 = vmatprep.subr.bf16.mxu0 %v429_v5  ;;  %v448_v18 = vld [vmem:[#allocation7 + $0x38] sm:$0xff]   ;;  %v451_v22 = vld [vmem:[#allocation7 + $0x20] sm:$0xff]   ;;  %v453_v24 = vld [vmem:[#allocation7 + $0x10] sm:$0xff]   ;;  %408 = vmatprep.mubr.msk.bf16.mxu1 %vm559_vm0, %v558_v19  ;;  %s343_s2 = sshll.u32 %s560_s0, 4  ;;  %s344_s2 = int_to_ptr.vmem [resolvable:$true] %s343_s2 }
  0x30   :  { %393 = vmatpush3.bf16.msra.mxu1 %v448_v18  ;;  %v452_v23 = vld [vmem:[#allocation7 + $0x18] sm:$0xff]   ;;  %v454_v25 = vld [vmem:[#allocation7 + $0x8] sm:$0xff]   ;;  %v455_v26 = vld [vmem:[#allocation7] sm:$0xff]   ;;  %s524_s30 = scalar_lea.vmem %s344_s2, 256  ;;  %p529_p2 = scmp.lt.s32.totalorder %s344_s2, %s344_s2 }
  0x31   :  { %394 = vmatprep.subr.bf16.mxu1 %v558_v19  ;;  %p525_p1 = scmp.ne.s32.totalorder %s344_s2, %s524_s30  ;;  %p530_p3 = scmp.lt.s32.totalorder %s524_s30, %s524_s30 }
  0x32   :  { %172 = vmatpush1.bf16.msra.mxu0 %v431_v6 }
  0x33   :  { %173 = vmatprep.subr.bf16.mxu0 %v432_v7  ;;  %p531_p4 = por %p530_p3, %p529_p2 }
  0x34   :  { %395 = vmatpush3.bf16.msra.mxu1 %v449_v20 }
  0x35   :  { %396 = vmatprep.subr.bf16.mxu1 %v558_v19  ;;  %p532_p5 = pnand %p531_p4, %p525_p1 }
  0x36   :  { %174 = vmatpush1.bf16.msra.mxu0 %v434_v8 }
  0x37   :  { %175 = vmatprep.subr.bf16.mxu0 %v435_v9 }
  0x38   :  { %397 = vmatpush3.bf16.msra.mxu1 %v450_v21 }
  0x39   :  { %398 = vmatprep.subr.bf16.mxu1 %v558_v19 }
  0x3a   :  { %176 = vmatpush1.bf16.msra.mxu0 %v437_v10 }
  0x3b   :  { %177 = vmatprep.subr.bf16.mxu0 %v438_v11 }
  0x3c   :  { %399 = vmatpush3.bf16.msra.mxu1 %v451_v22 }
  0x3d   :  { %400 = vmatprep.subr.bf16.mxu1 %v558_v19 }
  0x3e   :  { %178 = vmatpush1.bf16.msra.mxu0 %v440_v12 }
  0x3f   :  { %179 = vmatprep.subr.bf16.mxu0 %v441_v13 }
  0x40   :  { %401 = vmatpush3.bf16.msra.mxu1 %v452_v23 }
  0x41   :  { %402 = vmatprep.subr.bf16.mxu1 %v558_v19 }
  0x42   :  { %180 = vmatpush1.bf16.msra.mxu0 %v443_v14 }
  0x43   :  { %181 = vmatprep.subr.bf16.mxu0 %v444_v15 }
  0x44   :  { %403 = vmatpush3.bf16.msra.mxu1 %v453_v24 }
  0x45   :  { %404 = vmatprep.subr.bf16.mxu1 %v558_v19 }
  0x46   :  { %182 = vmatpush1.bf16.msra.mxu0 %v446_v16 }
  0x48   :  { %405 = vmatpush3.bf16.msra.mxu1 %v454_v25 }
  0x49   :  { %200 = vmatmul.mubr.bf16.vlgmr.msra.gmra.mxu0 %v447_v17  ;;  %406 = vmatprep.subr.bf16.mxu1 %v558_v19 }
  0x4c   :  { %407 = vmatpush3.bf16.msra.mxu1 %v455_v26 }
 0x109   :  { %v201_v27 = vpop.f32.mrf.mxu0 }
 0x10b   :  { %v203_v28 = vpop.f32.mrf.mxu0 }
 0x10c   :  { %v373_v29 = vmul.f32 -1.442695, %v203_v28 }
 0x10d   :  { %v205_v30 = vpop.f32.mrf.mxu0 }
 0x10e   :  { %456 = vpow2.f32 %v373_v29 }
 0x10f   :  { %v207_v31 = vpop.f32.mrf.mxu0 }
 0x110   :  { %v374_v32 = vmul.f32 -1.442695, %v207_v31 }
 0x112   :  { %458 = vpow2.f32 %v374_v32 }
 0x11b   :  { %v457_v33 = vpop.eup %456 }
 0x11c   :  { %v216_v34 = vadd.f32 1.0, %v457_v33 }
 0x11e   :  { %460 = vrcp.f32 %v216_v34 }
 0x11f   :  { %v459_v35 = vpop.eup %458 }
 0x120   :  { %v217_v36 = vadd.f32 1.0, %v459_v35 }
 0x122   :  { %462 = vrcp.f32 %v217_v36 }
 0x12b   :  { %v461_v37 = vpop.eup %460 }
 0x12c   :  { %v222_v38 = vmul.f32 %v461_v37, %v203_v28 }
 0x12e   :  { %v224_v41 = vmul.f32 %v222_v38, %v201_v27 }
 0x12f   :  { %v463_v39 = vpop.eup %462 }
 0x130   :  { %v223_v40 = vmul.f32 %v463_v39, %v207_v31 }
 0x132   :  { %v225_v42 = vmul.f32 %v223_v40, %v205_v30 }
 0x134   :  { %v226_v43 = vpack.c.bf16 %v225_v42, %v224_v41 }
 0x136   :  { %409 = vmatmul.mubr.bf16.vlgmr.msra.gmra.mxu1 %v226_v43 }
 0x1f6   :  { %v327_v44 = vpop.f32.mrf.mxu1 }
 0x1f7   :  { %336 = vst [vmem:[#allocation8] sm:$0xff] %v327_v44 }
 0x1f8   :  { %v410_v45 = vpop.f32.mrf.mxu1 }
 0x1fa   :  { %v330_v46 = vpop.f32.mrf.mxu1 }
 0x1fb   :  { %337 = vst [vmem:[#allocation8 + $0x8] sm:$0xff] %v330_v46 }
 0x1fc   :  { %v411_v47 = vpop.f32.mrf.mxu1 }
 0x1fd   :  { %535 = shalt.err (!%p532_p5)
}
 0x1fe   :  { %349 = dma.vmem_to_hbm [thread:$0]  %s344_s2, 256, %s602_s3, [#allocation4], %s551_s15, %s551_s15, %s552_s16  }
 0x1ff   :  { %548 = dma.done.wait [#allocation4], 256  }
 0x200   :  { %549 = vsyncadd [#allocation4], 4294967040 }
 0x201   :  { %353 = vsyncpa [#allocation3], 1 }
 0x202   :  { %354 = vsyncpa [#allocation6], 1 }
 0x203   :  { %355 = vsyncpa [#allocation4], 1 }

</bundles_post_ra>
